<compile_context>
chip_gen: v6e
topology: v6e:2x2x1
jax: 0.10.0
libtpu: 0.0.40
codegen_flags: <defaults>
</compile_context>

<pallas_src>
from functools import partial
from typing import List, NamedTuple, Tuple

import jax
import jax.numpy as jnp
from jax import lax
from jax.experimental import pallas as pl
from jax.experimental.pallas import tpu as pltpu

_LANE = 128


def _round_up(n: int, m: int) -> int:
    return ((n + m - 1) // m) * m


def _cdiv(a: int, b: int) -> int:
    return -(-a // b)


def _pad2(a: jax.Array, rows: int, cols: int) -> jax.Array:
    pr, pc = rows - a.shape[0], cols - a.shape[1]
    if pr or pc:
        a = jnp.pad(a, ((0, pr), (0, pc)))
    return a


# --------------------------------------------------------------------------- #
# Kernel
# --------------------------------------------------------------------------- #
def _dnn_kernel(x_ref, w1_ref, b1_ref, w2_ref, b2_ref, w3_ref, b3_ref,
                w4t_ref, b4_ref, out_ref):
    """Fused 4-layer MLP on one batch tile, fully resident in VMEM.

    Matmul inputs are bf16, accumulation in f32 (preferred_element_type);
    biases / activations / sigmoid in f32; hidden activations cast back to
    bf16 before the next MXU pass. The last layer is computed transposed so
    the output tile is (8, tile) f32, lane-dense with batch on the lane axis.
    """
    h = x_ref[...]  # bf16 (tile, d_in)

    for w_ref, b_ref in ((w1_ref, b1_ref), (w2_ref, b2_ref), (w3_ref, b3_ref)):
        z = jnp.dot(h, w_ref[...], preferred_element_type=jnp.float32) + b_ref[...]
        h = jnp.maximum(z, 0.0).astype(jnp.bfloat16)          # ReLU

    # (8, K) x (tile, K) contracting K -> (8, tile): batch ends up on lanes.
    logits = lax.dot_general(
        w4t_ref[...], h,
        dimension_numbers=(((1,), (1,)), ((), ())),
        preferred_element_type=jnp.float32) + b4_ref[...]
    out_ref[...] = jax.nn.sigmoid(logits)                     # Sigmoid, f32


# --------------------------------------------------------------------------- #
# Parameter preparation (done once, not per forward call)
# --------------------------------------------------------------------------- #
class PreparedDNNParams(NamedTuple):
    weights: Tuple[jax.Array, ...]   # (w1,b1,w2,b2,w3,b3,w4t,b4col) padded/cast
    d_in: int
    out_dim: int
    pad_dims: Tuple[int, ...]


def prepare_dnn_params(params: List[Tuple[jax.Array, jax.Array]]) -> PreparedDNNParams:
    """Zero-pad hidden widths to multiples of 128 (lane-dense matmuls), pad the
    final output dim to 8 sublanes (stored transposed), and cast weights to
    bf16 / biases to f32. Input K dim is left unpadded."""
    d_in = params[0][0].shape[0]
    dims = [d_in] + [w.shape[1] for (w, _) in params]
    pad_dims = ([d_in] + [_round_up(d, _LANE) for d in dims[1:-1]]
                + [_round_up(dims[-1], 8)])

    flat = []
    for li, (w, b) in enumerate(params[:-1]):
        k_in, k_out = pad_dims[li], pad_dims[li + 1]
        flat.append(_pad2(w, k_in, k_out).astype(jnp.bfloat16))
        flat.append(_pad2(b.reshape(1, -1), 1, k_out).astype(jnp.float32))

    w4, b4 = params[-1]
    k_in, out_pad8 = pad_dims[-2], pad_dims[-1]
    flat.append(_pad2(w4.T, out_pad8, k_in).astype(jnp.bfloat16))      # (8, K)
    flat.append(_pad2(b4.reshape(-1, 1), out_pad8, 1).astype(jnp.float32))  # (8, 1)

    return PreparedDNNParams(tuple(flat), d_in, dims[-1], tuple(pad_dims))


# --------------------------------------------------------------------------- #
# Tiling / VMEM heuristics
# --------------------------------------------------------------------------- #
def _pick_tile(B: int, block_b: int) -> int:
    """Batch (M) tile: bf16-sublane-friendly for tiny B, MXU-height aligned and
    >=2 grid steps (v7x megacore) for B > 256, with limited padding waste."""
    if B <= 256:
        return min(_round_up(max(B, 16), 16), 256)
    n_steps = max(2, _cdiv(B, block_b))
    best = None
    for align in (256, 128):   # prefer 256 (v6e/v7x MXU height), 128 if it cuts waste
        eb = _round_up(_cdiv(B, n_steps), align)
        waste = _round_up(B, eb) - B
        key = (waste, -align)
        if best is None or key < best[0]:
            best = (key, eb)
    return best[1]


def _vmem_limit_bytes(eff_block: int, d_in: int, out_pad8: int,
                      max_hidden: int, weight_bytes: int) -> int:
    approx = (2 * eff_block * d_in * 2            # x tile, bf16, 2 bufs
              + 2 * out_pad8 * eff_block * 4      # out tile, f32, 2 bufs
              + 3 * eff_block * max_hidden * 4    # live f32/bf16 intermediates
              + 2 * weight_bytes)                 # resident weights/biases
    try:
        info = pltpu.get_tpu_info()
        phys = int(getattr(info, "vmem_capacity_bytes", 64 << 20))
    except Exception:
        phys = 64 << 20                            # assume smallest (v7x per-TC)
    cap = min(max(phys - (16 << 20), 32 << 20), 112 << 20)   # 48 MiB on v7x, 112 on 128 MiB parts
    return int(min(cap, max(approx + (4 << 20), 16 << 20)))


# --------------------------------------------------------------------------- #
# Pallas wrapper (jitted; pad/cast of x fused into the same XLA program)
# --------------------------------------------------------------------------- #
@partial(jax.jit, static_argnames=("d_in", "out_dim", "pad_dims", "block_b"))
def _dnn_pallas_impl(x, flat_params, *, d_in, out_dim, pad_dims, block_b):
    B = x.shape[0]
    eff_block = _pick_tile(B, block_b)
    b_pad = _round_up(B, eff_block)
    n_steps = b_pad // eff_block
    out_pad8 = pad_dims[-1]

    x_p = x
    if b_pad != B:
        x_p = jnp.pad(x, ((0, b_pad - B), (0, 0)))
    x_p = x_p.astype(jnp.bfloat16)

    in_specs = [pl.BlockSpec((eff_block, d_in), lambda i: (i, 0))]
    for arr in flat_params:
        # Full-array blocks with constant index -> DMA'd once, reused every step.
        in_specs.append(pl.BlockSpec(arr.shape, lambda i: (0, 0)))

    out_spec = pl.BlockSpec((out_pad8, eff_block), lambda i: (0, i))

    weight_bytes = sum(int(a.size) * a.dtype.itemsize for a in flat_params)
    vmem_limit = _vmem_limit_bytes(eff_block, d_in, out_pad8,
                                   max(pad_dims[1:-1]), weight_bytes)

    out_t = pl.pallas_call(
        _dnn_kernel,
        out_shape=jax.ShapeDtypeStruct((out_pad8, b_pad), jnp.float32),
        grid=(n_steps,),
        in_specs=in_specs,
        out_specs=out_spec,
        compiler_params=pltpu.CompilerParams(
            dimension_semantics=("parallel",),
            vmem_limit_bytes=vmem_limit),
    )(x_p, *flat_params)

    # out_t is (8, b_pad): 2 real channels + sigmoid(0)=0.5 padding rows / cols.
    return out_t[:out_dim, :B].T


def dnn_pallas(x: jax.Array, prep: PreparedDNNParams, block_b: int = 2048) -> jax.Array:
    """x: (B, in_channels) f32/bf16 -> (B, 2) f32."""
    return _dnn_pallas_impl(x, prep.weights, d_in=prep.d_in, out_dim=prep.out_dim,
                            pad_dims=prep.pad_dims, block_b=block_b)


# --------------------------------------------------------------------------- #
# Module-level API mirroring the PyTorch DNN
# --------------------------------------------------------------------------- #
def init_dnn_params(key, in_channels: int, hidden_dims=None):
    """PyTorch nn.Linear default init: U(-1/sqrt(fan_in), 1/sqrt(fan_in)).
    Weights stored transposed: (fan_in, fan_out)."""
    if hidden_dims is None:
        hidden_dims = [200, 100, 50]
    dims = [in_channels] + hidden_dims + [2]
    params = []
    for i in range(len(dims) - 1):
        fan_in, fan_out = dims[i], dims[i + 1]
        key, kw, kb = jax.random.split(key, 3)
        bound = 1.0 / (fan_in ** 0.5)
        w = jax.random.uniform(kw, (fan_in, fan_out), jnp.float32, -bound, bound)
        b = jax.random.uniform(kb, (1, fan_out), jnp.float32, -bound, bound)
        params.append((w, b))
    return params


def dnn_forward(params, inputs):
    """Mirrors DNN.forward: `inputs` is a tuple, features at inputs[0].
    Returns [z, inputs]. `params` may be raw [(W,b),...] or PreparedDNNParams."""
    prep = params if isinstance(params, PreparedDNNParams) else prepare_dnn_params(params)
    z = dnn_pallas(inputs[0], prep)
    return [z, inputs]
    # TODO(synk): loss_function (F.mse_loss vs inputs[1]) is a host-side scalar
    # loss, intentionally left to plain JAX: jnp.mean((z - inputs[1]) ** 2).


def _reference_forward(params, x):
    h = x
    for (w, b) in params[:-1]:
        h = jnp.maximum(h @ w + b, 0.0)
    w, b = params[-1]
    return jax.nn.sigmoid(h @ w + b)


if __name__ == "__main__":
    key = jax.random.PRNGKey(0)
    k_params, k_x, k_c, k_x2 = jax.random.split(key, 4)

    batch = 8
    in_channels = 32
    raw_params = init_dnn_params(k_params, in_channels)
    prep = prepare_dnn_params(raw_params)   # pad + cast once, reused every call

    x = jax.random.normal(k_x, (batch, in_channels), dtype=jnp.float32)
    coords = jax.random.normal(k_c, (batch, 2), dtype=jnp.float32)  # input[1] in torch module

    out = dnn_forward(prep, (x, coords))
    z = jax.block_until_ready(out[0])

    # Sanity check vs. plain-JAX f32 reference (kernel uses bf16 matmul inputs
    # with f32 accumulation, so allow a small tolerance).
    z_ref = _reference_forward(raw_params, x)
    assert z.shape == (batch, 2)
    assert jnp.allclose(z, z_ref, atol=2e-2, rtol=2e-2), "mismatch vs reference (small batch)"

    # Also exercise the multi-step grid / ragged-batch path (B > 256 -> >=2 tiles).
    x2 = jax.random.normal(k_x2, (260, in_channels), dtype=jnp.float32)
    z2 = jax.block_until_ready(dnn_pallas(x2, prep))
    z2_ref = _reference_forward(raw_params, x2)
    assert z2.shape == (260, 2)
    assert jnp.allclose(z2, z2_ref, atol=2e-2, rtol=2e-2), "mismatch vs reference (multi-tile)"

    print("KERNEL_OK")
</pallas_src>

<mosaic_0001>
module attributes {stable_mosaic.version = 11 : i64} {
  func.func @_dnn_kernel(%arg0: i32, %arg1: memref<16x32xbf16, #tpu.memory_space<vmem>>, %arg2: memref<32x256xbf16, #tpu.memory_space<vmem>>, %arg3: memref<1x256xf32, #tpu.memory_space<vmem>>, %arg4: memref<256x128xbf16, #tpu.memory_space<vmem>>, %arg5: memref<1x128xf32, #tpu.memory_space<vmem>>, %arg6: memref<128x128xbf16, #tpu.memory_space<vmem>>, %arg7: memref<1x128xf32, #tpu.memory_space<vmem>>, %arg8: memref<8x128xbf16, #tpu.memory_space<vmem>>, %arg9: memref<8x1xf32, #tpu.memory_space<vmem>>, %arg10: memref<8x16xf32, #tpu.memory_space<vmem>>) attributes {dimension_semantics = [#tpu.dimension_semantics<parallel>], iteration_bounds = array<i64: 1>, scalar_prefetch = 0 : i64, scratch_operands = 0 : i64, tpu.core_type = #tpu.core_type<tc>, window_params = [{transform_indices = @transform_0, window_bounds = array<i64: 16, 32>}, {pipeline_mode = #tpu.pipeline_mode<synchronous>, transform_indices = @transform_1, window_bounds = array<i64: 32, 256>}, {pipeline_mode = #tpu.pipeline_mode<synchronous>, transform_indices = @transform_2, window_bounds = array<i64: 1, 256>}, {pipeline_mode = #tpu.pipeline_mode<synchronous>, transform_indices = @transform_3, window_bounds = array<i64: 256, 128>}, {pipeline_mode = #tpu.pipeline_mode<synchronous>, transform_indices = @transform_4, window_bounds = array<i64: 1, 128>}, {pipeline_mode = #tpu.pipeline_mode<synchronous>, transform_indices = @transform_5, window_bounds = array<i64: 128, 128>}, {pipeline_mode = #tpu.pipeline_mode<synchronous>, transform_indices = @transform_6, window_bounds = array<i64: 1, 128>}, {pipeline_mode = #tpu.pipeline_mode<synchronous>, transform_indices = @transform_7, window_bounds = array<i64: 8, 128>}, {pipeline_mode = #tpu.pipeline_mode<synchronous>, transform_indices = @transform_8, window_bounds = array<i64: 8, 1>}, {transform_indices = @transform_9, window_bounds = array<i64: 8, 16>}]} {
    %c0 = arith.constant 0 : index
    %c0_0 = arith.constant 0 : index
    %0 = vector.load %arg1[%c0, %c0_0] : memref<16x32xbf16, #tpu.memory_space<vmem>>, vector<16x32xbf16>
    %c0_1 = arith.constant 0 : index
    %c0_2 = arith.constant 0 : index
    %1 = vector.load %arg2[%c0_1, %c0_2] : memref<32x256xbf16, #tpu.memory_space<vmem>>, vector<32x256xbf16>
    %cst = arith.constant dense<0.000000e+00> : vector<16x256xf32>
    %2 = tpu.matmul %0, %1, %cst {dimension_numbers = #tpu.dot_dimension_numbers<[1], [0], [0], [1], [0, 0, 1, 1], [], []>} : vector<16x32xbf16>, vector<32x256xbf16>, vector<16x256xf32> -> vector<16x256xf32>
    %c0_3 = arith.constant 0 : index
    %c0_4 = arith.constant 0 : index
    %3 = vector.load %arg3[%c0_3, %c0_4] : memref<1x256xf32, #tpu.memory_space<vmem>>, vector<1x256xf32>
    %4 = vector.broadcast %3 : vector<1x256xf32> to vector<16x256xf32>
    %5 = arith.addf %2, %4 : vector<16x256xf32>
    %cst_5 = arith.constant 0.000000e+00 : f32
    %6 = vector.broadcast %cst_5 : f32 to vector<16x256xf32>
    %7 = arith.maximumf %5, %6 : vector<16x256xf32>
    %8 = arith.truncf %7 : vector<16x256xf32> to vector<16x256xbf16>
    %c0_6 = arith.constant 0 : index
    %c0_7 = arith.constant 0 : index
    %9 = vector.load %arg4[%c0_6, %c0_7] : memref<256x128xbf16, #tpu.memory_space<vmem>>, vector<256x128xbf16>
    %cst_8 = arith.constant dense<0.000000e+00> : vector<16x128xf32>
    %10 = tpu.matmul %8, %9, %cst_8 {dimension_numbers = #tpu.dot_dimension_numbers<[1], [0], [0], [1], [0, 0, 1, 1], [], []>} : vector<16x256xbf16>, vector<256x128xbf16>, vector<16x128xf32> -> vector<16x128xf32>
    %c0_9 = arith.constant 0 : index
    %c0_10 = arith.constant 0 : index
    %11 = vector.load %arg5[%c0_9, %c0_10] : memref<1x128xf32, #tpu.memory_space<vmem>>, vector<1x128xf32>
    %12 = vector.broadcast %11 : vector<1x128xf32> to vector<16x128xf32>
    %13 = arith.addf %10, %12 : vector<16x128xf32>
    %cst_11 = arith.constant 0.000000e+00 : f32
    %14 = vector.broadcast %cst_11 : f32 to vector<16x128xf32>
    %15 = arith.maximumf %13, %14 : vector<16x128xf32>
    %16 = arith.truncf %15 : vector<16x128xf32> to vector<16x128xbf16>
    %c0_12 = arith.constant 0 : index
    %c0_13 = arith.constant 0 : index
    %17 = vector.load %arg6[%c0_12, %c0_13] : memref<128x128xbf16, #tpu.memory_space<vmem>>, vector<128x128xbf16>
    %cst_14 = arith.constant dense<0.000000e+00> : vector<16x128xf32>
    %18 = tpu.matmul %16, %17, %cst_14 {dimension_numbers = #tpu.dot_dimension_numbers<[1], [0], [0], [1], [0, 0, 1, 1], [], []>} : vector<16x128xbf16>, vector<128x128xbf16>, vector<16x128xf32> -> vector<16x128xf32>
    %c0_15 = arith.constant 0 : index
    %c0_16 = arith.constant 0 : index
    %19 = vector.load %arg7[%c0_15, %c0_16] : memref<1x128xf32, #tpu.memory_space<vmem>>, vector<1x128xf32>
    %20 = vector.broadcast %19 : vector<1x128xf32> to vector<16x128xf32>
    %21 = arith.addf %18, %20 : vector<16x128xf32>
    %cst_17 = arith.constant 0.000000e+00 : f32
    %22 = vector.broadcast %cst_17 : f32 to vector<16x128xf32>
    %23 = arith.maximumf %21, %22 : vector<16x128xf32>
    %24 = arith.truncf %23 : vector<16x128xf32> to vector<16x128xbf16>
    %c0_18 = arith.constant 0 : index
    %c0_19 = arith.constant 0 : index
    %25 = vector.load %arg8[%c0_18, %c0_19] : memref<8x128xbf16, #tpu.memory_space<vmem>>, vector<8x128xbf16>
    %cst_20 = arith.constant dense<0.000000e+00> : vector<8x16xf32>
    %26 = tpu.matmul %25, %24, %cst_20 {dimension_numbers = #tpu.dot_dimension_numbers<[1], [1], [0], [0], [0, 0, 1, 0], [], []>} : vector<8x128xbf16>, vector<16x128xbf16>, vector<8x16xf32> -> vector<8x16xf32>
    %c0_21 = arith.constant 0 : index
    %c0_22 = arith.constant 0 : index
    %27 = vector.load %arg9[%c0_21, %c0_22] : memref<8x1xf32, #tpu.memory_space<vmem>>, vector<8x1xf32>
    %28 = vector.broadcast %27 : vector<8x1xf32> to vector<8x16xf32>
    %29 = arith.addf %26, %28 : vector<8x16xf32>
    %30 = arith.negf %29 : vector<8x16xf32>
    %31 = math.exp %30 : vector<8x16xf32>
    %cst_23 = arith.constant 1.000000e+00 : f32
    %32 = vector.broadcast %cst_23 : f32 to vector<8x16xf32>
    %33 = arith.addf %32, %31 : vector<8x16xf32>
    %34 = arith.divf %32, %33 : vector<8x16xf32>
    %c0_24 = arith.constant 0 : index
    %c0_25 = arith.constant 0 : index
    %35 = vector.load %arg10[%c0_24, %c0_25] : memref<8x16xf32, #tpu.memory_space<vmem>>, vector<8x16xf32>
    tpu.vector_store %arg10[%c0_24, %c0_25], %34 {strides = array<i32>} : memref<8x16xf32, #tpu.memory_space<vmem>>, vector<8x16xf32>,
    return
  }
  func.func @transform_0(%arg0: i32) -> (i32, i32) {
    %c0_i32 = arith.constant 0 : i32
    %c0_i32_0 = arith.constant 0 : i32
    return %arg0, %c0_i32 : i32, i32
  }
  func.func @transform_1(%arg0: i32) -> (i32, i32) {
    %c0_i32 = arith.constant 0 : i32
    %c0_i32_0 = arith.constant 0 : i32
    %c0_i32_1 = arith.constant 0 : i32
    return %c0_i32, %c0_i32_0 : i32, i32
  }
  func.func @transform_2(%arg0: i32) -> (i32, i32) {
    %c0_i32 = arith.constant 0 : i32
    %c0_i32_0 = arith.constant 0 : i32
    %c0_i32_1 = arith.constant 0 : i32
    return %c0_i32, %c0_i32_0 : i32, i32
  }
  func.func @transform_3(%arg0: i32) -> (i32, i32) {
    %c0_i32 = arith.constant 0 : i32
    %c0_i32_0 = arith.constant 0 : i32
    %c0_i32_1 = arith.constant 0 : i32
    return %c0_i32, %c0_i32_0 : i32, i32
  }
  func.func @transform_4(%arg0: i32) -> (i32, i32) {
    %c0_i32 = arith.constant 0 : i32
    %c0_i32_0 = arith.constant 0 : i32
    %c0_i32_1 = arith.constant 0 : i32
    return %c0_i32, %c0_i32_0 : i32, i32
  }
  func.func @transform_5(%arg0: i32) -> (i32, i32) {
    %c0_i32 = arith.constant 0 : i32
    %c0_i32_0 = arith.constant 0 : i32
    %c0_i32_1 = arith.constant 0 : i32
    return %c0_i32, %c0_i32_0 : i32, i32
  }
  func.func @transform_6(%arg0: i32) -> (i32, i32) {
    %c0_i32 = arith.constant 0 : i32
    %c0_i32_0 = arith.constant 0 : i32
    %c0_i32_1 = arith.constant 0 : i32
    return %c0_i32, %c0_i32_0 : i32, i32
  }
  func.func @transform_7(%arg0: i32) -> (i32, i32) {
    %c0_i32 = arith.constant 0 : i32
    %c0_i32_0 = arith.constant 0 : i32
    %c0_i32_1 = arith.constant 0 : i32
    return %c0_i32, %c0_i32_0 : i32, i32
  }
  func.func @transform_8(%arg0: i32) -> (i32, i32) {
    %c0_i32 = arith.constant 0 : i32
    %c0_i32_0 = arith.constant 0 : i32
    %c0_i32_1 = arith.constant 0 : i32
    return %c0_i32, %c0_i32_0 : i32, i32
  }
  func.func @transform_9(%arg0: i32) -> (i32, i32) {
    %c0_i32 = arith.constant 0 : i32
    %c0_i32_0 = arith.constant 0 : i32
    return %c0_i32, %arg0 : i32, i32
  }
}

</mosaic_0001>

<bundles_post_ra>
// kernel: _dnn_pallas_impl.1
= control target key start
LH: loop header
LB: loop body
LE: loop exit
PB: predicated region body
PF: predicated region fallthrough
CT: control target
= control target key end

     0   :  { %14 = vsyncpa [#allocation3], 0  ;;  %s820_s0 = inlined_call_operand.vmem [shape: bf16[16,32], index: 0, kind: input, shape index: {}]   ;;  %s821_s1 = inlined_call_operand.vmem [shape: bf16[32,256], index: 1, kind: input, shape index: {}]   ;;  %s822_s2 = inlined_call_operand.hbm [shape: f32[1,256], index: 2, kind: input, shape index: {}]   ;;  %s823_s3 = inlined_call_operand.hbm [shape: bf16[256,128], index: 3, kind: input, shape index: {}]   ;;  %s824_s4 = inlined_call_operand.vmem [shape: f32[1,128], index: 4, kind: input, shape index: {}]   ;;  %s825_s5 = inlined_call_operand.hbm [shape: bf16[128,128], index: 5, kind: input, shape index: {}]   ;;  %s826_s6 = inlined_call_operand.vmem [shape: f32[1,128], index: 6, kind: input, shape index: {}]   ;;  %s827_s7 = inlined_call_operand.vmem [shape: bf16[8,128], index: 7, kind: input, shape index: {}]   ;;  %s828_s8 = inlined_call_operand.vmem [shape: f32[8,1], index: 8, kind: input, shape index: {}]   ;;  %s829_s9 = inlined_call_operand.vmem [shape: f32[8,16], index: 9, kind: output, shape index: {}]  }
   0x1   :  { %15 = vsyncpa [#allocation5], 0  ;;  %s723_s30 = smov [#allocation4]  }
   0x2   :  { %s35_s10 = sshll.u32 %s723_s30, 4  ;;  %s36_s10 = int_to_ptr.vmem [resolvable:$true] %s35_s10 }
   0x3   :  { %s667_s11 = scalar_lea.vmem %s36_s10, 2048  ;;  %p672_p1 = scmp.lt.s32.totalorder %s36_s10, %s36_s10 }
   0x4   :  { %p668_p0 = scmp.ne.s32.totalorder %s36_s10, %s667_s11  ;;  %p673_p2 = scmp.lt.s32.totalorder %s667_s11, %s667_s11 }
   0x6   :  { %p674_p3 = por %p673_p2, %p672_p1 }
   0x8   :  { %p675_p4 = pnand %p674_p3, %p668_p0 }
   0xa   :  { %678 = shalt.err (!%p675_p4)
}
   0xb   :  { %s724_s12 = smov 64   ;;  %s725_s13 = smov 4  }
   0xc   :  { %41 = dma.hbm_to_vmem [thread:$0]  %s823_s3, 2048, %s36_s10, [#allocation5], %s724_s12, %s724_s12, %s725_s13  }
   0xd   :  { %s726_s16 = smov [#allocation2]   ;;  %s727_s18 = smov [#allocation6]  }
   0xe   :  { %s26_s17 = sshll.u32 %s726_s16, 4  ;;  %s49_s19 = sshll.u32 %s727_s18, 4  ;;  %s27_s17 = int_to_ptr.vmem [resolvable:$true] %s26_s17  ;;  %s50_s19 = int_to_ptr.vmem [resolvable:$true] %s49_s19 }
   0xf   :  { %s687_s20 = scalar_lea.vmem %s27_s17, 32  ;;  %p692_p6 = scmp.lt.s32.totalorder %s27_s17, %s27_s17 }
  0x10   :  { %p688_p5 = scmp.ne.s32.totalorder %s27_s17, %s687_s20  ;;  %p693_p7 = scmp.lt.s32.totalorder %s687_s20, %s687_s20 }
  0x12   :  { %p694_p8 = por %p693_p7, %p692_p6 }
  0x14   :  { %p695_p9 = pnand %p694_p8, %p688_p5 }
  0x16   :  { %698 = shalt.err (!%p695_p9)
}
  0x17   :  { %29 = dma.hbm_to_vmem [thread:$0]  %s822_s2, 32, %s27_s17, [#allocation3]  }
  0x18   :  { %s707_s23 = scalar_lea.vmem %s50_s19, 1024  ;;  %p712_p11 = scmp.lt.s32.totalorder %s50_s19, %s50_s19 }
  0x19   :  { %p708_p10 = scmp.ne.s32.totalorder %s50_s19, %s707_s23  ;;  %p713_p12 = scmp.lt.s32.totalorder %s707_s23, %s707_s23 }
  0x1b   :  { %p714_p13 = por %p713_p12, %p712_p11 }
  0x1d   :  { %p715_p0 = pnand %p714_p13, %p708_p10 }
  0x1f   :  { %718 = shalt.err (!%p715_p0)
}
  0x20   :  { %55 = dma.hbm_to_vmem [thread:$0]  %s825_s5, 1024, %s50_s19, [#allocation5], %s724_s12, %s724_s12, %s725_s13  }
  0x21   :  { %719 = dma.done.wait [#allocation3], 32  }
  0x22   :  { %720 = vsyncadd [#allocation3], 4294967264 }
  0x23   :  { %721 = dma.done.wait [#allocation5], 3072  }
  0x24   :  { %722 = vsyncadd [#allocation5], 4294964224  ;;  %v728_v0 = vmov 0   ;;  %v624_v1 = vld [vmem:[%s821_s1 + $0x14] ss:$8 sps:$4 sm:$0xff]   ;;  %v630_v5 = vld [vmem:[%s820_s0] sm:$0xff]   ;;  %v80_v27 = vlaneseq }
  0x25   :  { %151 = vmatprep.mubr.bf16.mxu0 %v728_v0  ;;  %623 = vset.pattern.permute.xlu0 %v728_v0  ;;  %v626_v2 = vld [vmem:[%s821_s1 + $0x10] ss:$8 sps:$4 sm:$0xff]   ;;  %v627_v3 = vld [vmem:[%s821_s1 + $0x4] ss:$8 sps:$4 sm:$0xff]   ;;  %v629_v4 = vld [vmem:[%s821_s1] ss:$8 sps:$4 sm:$0xff]  }
  0x26   :  { %131 = vmatprep.subr.bf16.mxu0 %v624_v1  ;;  %v631_v6 = vld [vmem:[#allocation4 + $0x78] sm:$0xff]   ;;  %v633_v8 = vld [vmem:[#allocation4 + $0x70] sm:$0xff]   ;;  %vm115_vm0 = vcmask 261120   ;;  %v635_v10 = vld [vmem:[#allocation4 + $0x68] sm:$0xff]   ;;  %v729_v23 = vmov 0.0   ;;  %v81_v28 = vshrl.u32 %v80_v27, 7 }
  0x27   :  { %132 = vmatpush1.bf16.msra.mxu0 %v626_v2  ;;  %v632_v7 = vld [vmem:[#allocation4 + $0x38] sm:$0xff]   ;;  %556 = vmatprep.subr.bf16.mxu1 %v631_v6  ;;  %v634_v9 = vld [vmem:[#allocation4 + $0x30] sm:$0xff]   ;;  %v636_v11 = vld [vmem:[#allocation4 + $0x28] sm:$0xff]   ;;  %vm730_vm1 = vmmov 0   ;;  %vm515_vm2 = vcmask 130048  }
  0x28   :  { %133 = vmatprep.subr.bf16.mxu0 %v627_v3  ;;  %557 = vmatpush3.bf16.msra.mxu1 %v632_v7  ;;  %v637_v12 = vld [vmem:[#allocation4 + $0x60] sm:$0xff]   ;;  %v639_v14 = vld [vmem:[#allocation4 + $0x58] sm:$0xff]   ;;  %v641_v16 = vld [vmem:[#allocation4 + $0x50] sm:$0xff]   ;;  %v86_v29 = vsub.s32 1, %v81_v28  ;;  %v82_v30 = vsub.s32 0, %v81_v28 }
  0x29   :  { %558 = vmatprep.subr.bf16.mxu1 %v633_v8  ;;  %v638_v13 = vld [vmem:[#allocation4 + $0x20] sm:$0xff]   ;;  %v640_v15 = vld [vmem:[#allocation4 + $0x18] sm:$0xff]   ;;  %v642_v17 = vld [vmem:[#allocation4 + $0x10] sm:$0xff]  }
  0x2a   :  { %v643_v18 = vld [vmem:[#allocation4 + $0x48] sm:$0xff]   ;;  %v645_v20 = vld [vmem:[#allocation4 + $0x40] sm:$0xff]   ;;  %v647_v22 = vld [vmem:[#allocation6 + $0x38] sm:$0xff]  }
  0x2b   :  { %134 = vmatpush1.bf16.msra.mxu0 %v629_v4  ;;  %v644_v19 = vld [vmem:[#allocation4 + $0x8] sm:$0xff]   ;;  %v646_v21 = vld [vmem:[#allocation4] sm:$0xff]   ;;  %v648_v24 = vld [vmem:[#allocation6 + $0x30] sm:$0xff]  }
  0x2c   :  { %559 = vmatpush3.bf16.msra.mxu1 %v634_v9  ;;  %589 = vmatprep.subr.bf16.mxu0 %v729_v23  ;;  %v649_v25 = vld [vmem:[#allocation6 + $0x28] sm:$0xff]   ;;  %v650_v26 = vld [vmem:[#allocation6 + $0x20] sm:$0xff]   ;;  %v78_v31 = vld [vmem:[#allocation2] sm:$0x3] }
  0x2d   :  { %560 = vmatprep.subr.bf16.mxu1 %v635_v10  ;;  %v87_v33 = vrot.slane %v78_v31, %v86_v29  ;;  %v83_v34 = vrot.slane %v78_v31, %v82_v30  ;;  %v651_v48 = vld [vmem:[#allocation6 + $0x18] sm:$0xff]   ;;  %v652_v49 = vld [vmem:[#allocation6 + $0x10] sm:$0xff]   ;;  %v653_v50 = vld [vmem:[#allocation6 + $0x8] sm:$0xff]  }
  0x2e   :  { %528 = vmatmul.mubr.msk.bf16.vlgmr.msra.gmra.mxu0 %vm115_vm0, %v630_v5  ;;  %v654_v51 = vld [vmem:[#allocation6] sm:$0xff]   ;;  %v529_v55 = vld [vmem:[%s824_s4] ss:$0 sm:$0xff] }
  0x2f   :  { %590 = vmatpush3.bf16.msra.mxu0 %v647_v22  ;;  %605 = vmatprep.mubr.msk.bf16.mxu0 %vm730_vm1, %v729_v23  ;;  %v463_v0 = vld [vmem:[%s828_s8] sm:$0xff] }
  0x30   :  { %561 = vmatpush3.bf16.msra.mxu1 %v636_v11  ;;  %591 = vmatprep.subr.bf16.mxu0 %v729_v23  ;;  %v546_v1 = vld [vmem:[%s826_s6] ss:$0 sm:$0xff] }
  0x31   :  { %562 = vmatprep.subr.bf16.mxu1 %v637_v12  ;;  %466 = vperm.xlu0 %623, %v463_v0   ;;  %v462_v11 = vld [vmem:[%s827_s7] sm:$0xf] }
  0x33   :  { %592 = vmatpush3.bf16.msra.mxu0 %v648_v24 }
  0x34   :  { %563 = vmatpush3.bf16.msra.mxu1 %v638_v13  ;;  %593 = vmatprep.subr.bf16.mxu0 %v729_v23 }
  0x35   :  { %564 = vmatprep.subr.bf16.mxu1 %v639_v14 }
  0x37   :  { %594 = vmatpush3.bf16.msra.mxu0 %v649_v25 }
  0x38   :  { %565 = vmatpush3.bf16.msra.mxu1 %v640_v15  ;;  %595 = vmatprep.subr.bf16.mxu0 %v729_v23 }
  0x39   :  { %566 = vmatprep.subr.bf16.mxu1 %v641_v16 }
  0x3b   :  { %596 = vmatpush3.bf16.msra.mxu0 %v650_v26 }
  0x3c   :  { %567 = vmatpush3.bf16.msra.mxu1 %v642_v17  ;;  %597 = vmatprep.subr.bf16.mxu0 %v729_v23 }
  0x3d   :  { %568 = vmatprep.subr.bf16.mxu1 %v643_v18 }
  0x3f   :  { %598 = vmatpush3.bf16.msra.mxu0 %v651_v48 }
  0x40   :  { %569 = vmatpush3.bf16.msra.mxu1 %v644_v19  ;;  %599 = vmatprep.subr.bf16.mxu0 %v729_v23 }
  0x41   :  { %570 = vmatprep.subr.bf16.mxu1 %v645_v20 }
  0x43   :  { %600 = vmatpush3.bf16.msra.mxu0 %v652_v49 }
  0x44   :  { %571 = vmatpush3.bf16.msra.mxu1 %v646_v21  ;;  %601 = vmatprep.subr.bf16.mxu0 %v729_v23 }
  0x45   :  { %609 = vmatprep.subr.bf16.mxu1 %v729_v23 }
  0x47   :  { %602 = vmatpush3.bf16.msra.mxu0 %v653_v50 }
  0x48   :  { %603 = vmatprep.subr.bf16.mxu0 %v729_v23 }
  0x4b   :  { %604 = vmatpush3.bf16.msra.mxu0 %v654_v51 }
  0xac   :  { %v467_v12 = vpop.permute.xlu0 %466 }
  0xee   :  { %v153_v32 = vpop.f32.mrf.mxu0 }
  0xef   :  { %v154_v39 = vadd.f32 %v153_v32, %v83_v34 }
  0xf0   :  { %v155_v35 = vpop.f32.mrf.mxu0 }
  0xf1   :  { %v156_v37 = vadd.f32 %v155_v35, %v87_v33  ;;  %v162_v45 = vmax.f32 %v154_v39, 0.0 }
  0xf2   :  { %v157_v36 = vpop.f32.mrf.mxu0 }
  0xf3   :  { %v158_v38 = vadd.f32 %v157_v36, %v83_v34  ;;  %v163_v43 = vmax.f32 %v156_v37, 0.0 }
  0xf4   :  { %v159_v40 = vpop.f32.mrf.mxu0 }
  0xf5   :  { %v160_v41 = vadd.f32 %v159_v40, %v87_v33  ;;  %v164_v42 = vmax.f32 %v158_v38, 0.0 }
  0xf7   :  { %v165_v44 = vmax.f32 %v160_v41, 0.0  ;;  %v166_v47 = vpack.c.bf16 %v164_v42, %v162_v45 }
  0xf9   :  { %v167_v46 = vpack.c.bf16 %v165_v44, %v163_v43 }
  0xfb   :  { %335 = vmatprep.mubr.bf16.mxu1 %v167_v46 }
  0xfc   :  { %336 = vmatmul.mubr.bf16.vlgmr.msra.gmra.mxu1 %v166_v47 }
  0xfd   :  { %611 = vmatprep.mubr.msk.bf16.mxu1 %vm730_vm1, %v729_v23 }
 0x1bc   :  { %v572_v52 = vpop.f32.mrf.mxu1 }
 0x1be   :  { %v573_v53 = vpop.f32.mrf.mxu1 }
 0x1bf   :  { %v574_v54 = vadd.f32 %v573_v53, %v572_v52 }
 0x1c0   :  { %v575_v56 = vpop.f32.mrf.mxu1 }
 0x1c1   :  { %v338_v58 = vadd.f32 %v574_v54, %v529_v55 }
 0x1c2   :  { %v576_v57 = vpop.f32.mrf.mxu1 }
 0x1c3   :  { %v577_v59 = vadd.f32 %v576_v57, %v575_v56  ;;  %v344_v61 = vmax.f32 %v338_v58, 0.0 }
 0x1c5   :  { %v341_v60 = vadd.f32 %v577_v59, %v529_v55 }
 0x1c7   :  { %v345_v62 = vmax.f32 %v341_v60, 0.0 }
 0x1c9   :  { %v346_v63 = vpack.c.bf16 %v345_v62, %v344_v61 }
 0x1cb   :  { %606 = vmatmul.mubr.bf16.vlgmr.msra.gmra.mxu0 %v346_v63 }
 0x28b   :  { %v452_v2 = vpop.f32.mrf.mxu0 }
 0x28c   :  { %v453_v4 = vadd.f32 %v546_v1, %v452_v2 }
 0x28d   :  { %v607_v3 = vpop.f32.mrf.mxu0 }
 0x28e   :  { %v459_v8 = vmax.f32 %v453_v4, 0.0 }
 0x28f   :  { %v455_v5 = vpop.f32.mrf.mxu0 }
 0x290   :  { %v456_v6 = vadd.f32 %v546_v1, %v455_v5 }
 0x291   :  { %v608_v7 = vpop.f32.mrf.mxu0 }
 0x292   :  { %v460_v9 = vmax.f32 %v456_v6, 0.0 }
 0x294   :  { %v461_v10 = vpack.c.bf16 %v460_v9, %v459_v8 }
 0x296   :  { %610 = vmatpush3.bf16.xpose.msra.mxu1 %v461_v10 }
 0x29d   :  { %612 = vmatmul.mubr.bf16.vlgmr.msra.gmra.mxu1 %v462_v11 }
 0x35d   :  { %v503_v13 = vpop.f32.mrf.mxu1 }
 0x35e   :  { %v504_v14 = vadd.f32 %v503_v13, %v467_v12 }
 0x35f   :  { %v613_v15 = vpop.f32.mrf.mxu1 }
 0x360   :  { %v555_v16 = vmul.f32 -1.442695, %v504_v14 }
 0x361   :  { %v506_v17 = vpop.f32.mrf.mxu1 }
 0x362   :  { %655 = vpow2.f32 %v555_v16 }
 0x363   :  { %v614_v18 = vpop.f32.mrf.mxu1 }
 0x36f   :  { %v656_v19 = vpop.eup %655 }
 0x370   :  { %v512_v20 = vadd.f32 1.0, %v656_v19 }
 0x372   :  { %657 = vrcp.f32 %v512_v20 }
 0x37f   :  { %v658_v21 = vpop.eup %657 }
 0x380   :  { %516 = vst.msk [vmem:[%s829_s9] sm:$0xff] %vm515_vm2, %v658_v21 }
 0x381   :  { %521 = vsyncpa [#allocation3], 1 }
 0x382   :  { %522 = vsyncpa [#allocation5], 1 }

</bundles_post_ra>
